<compile_context>
chip_gen: v6e
topology: v6e:2x2x1
jax: 0.10.0
libtpu: 0.0.40
codegen_flags: <defaults>
</compile_context>

<pallas_src>
import jax
import jax.numpy as jnp
from jax.experimental import pallas as pl
from jax.experimental.pallas import tpu as pltpu


INPUT_SIZE = 4    # CartPole-v1 observation dim
OUTPUT_SIZE = 2   # CartPole-v1 action count
HID1 = 64
HID2 = 32

LANE = 128        # lane-padded width for every layer

# Packed parameter slab layout (rows x 128 lanes), all f32:
#   rows 0:4    -> W1 rows (4 x 128), real cols 0:64
#   row  4      -> b1 (real cols 0:64)
#   row  5      -> b2 (real cols 0:32)
#   row  6      -> b3 (real cols 0:2)
#   row  7      -> zero pad (keeps W2 8-row aligned)
#   rows 8:136  -> W2 padded to 128 x 128 (real block [0:64, 0:32])
#   rows 136:264-> W3 padded to 128 x 128 (real block [0:32, 0:2])
W1_ROW0 = 0
B1_ROW = 4
B2_ROW = 5
B3_ROW = 6
W2_ROW0 = 8
W3_ROW0 = W2_ROW0 + LANE          # 136
SLAB_ROWS = W3_ROW0 + LANE        # 264  (multiple of 8)


def dqn_kernel(x_ref, slab_ref, o_ref):
    x = x_ref[...]                                   # [B, 4]  f32

    b1 = slab_ref[B1_ROW:B1_ROW + 1, :]              # [1, 128]
    b2 = slab_ref[B2_ROW:B2_ROW + 1, :]              # [1, 128]
    b3 = slab_ref[B3_ROW:B3_ROW + 1, :]              # [1, 128]
    w1 = slab_ref[W1_ROW0:W1_ROW0 + INPUT_SIZE, :]   # [4, 128]
    w2 = slab_ref[W2_ROW0:W2_ROW0 + LANE, :]         # [128, 128]
    w3 = slab_ref[W3_ROW0:W3_ROW0 + LANE, :]         # [128, 128]

    # Layer 1 (K=4): VPU broadcast-FMAs instead of an MXU round-trip.
    h1 = jnp.broadcast_to(b1, (x.shape[0], LANE))
    for k in range(INPUT_SIZE):                      # static unroll, 4 FMAs
        h1 = h1 + x[:, k:k + 1] * w1[k:k + 1, :]
    h1 = jnp.maximum(h1, 0.0)                        # [B, 128]

    # Layer 2: MXU matmul, f32 accumulate, bias, ReLU.
    h2 = jnp.dot(h1, w2, preferred_element_type=jnp.float32) + b2
    h2 = jnp.maximum(h2, 0.0)                        # [B, 128]

    # Layer 3 (no activation).
    out = jnp.dot(h2, w3, preferred_element_type=jnp.float32) + b3
    o_ref[...] = out.astype(o_ref.dtype)             # lane-dense [B, 128] store


def pack_params(params):
    """Pack (w1,b1,w2,b2,w3,b3) into a single lane-padded [264, 128] slab."""
    w1, b1, w2, b2, w3, b3 = params
    slab = jnp.zeros((SLAB_ROWS, LANE), jnp.float32)
    slab = slab.at[W1_ROW0:W1_ROW0 + INPUT_SIZE, :HID1].set(w1)
    slab = slab.at[B1_ROW:B1_ROW + 1, :HID1].set(b1)
    slab = slab.at[W2_ROW0:W2_ROW0 + HID1, :HID2].set(w2)
    slab = slab.at[B2_ROW:B2_ROW + 1, :HID2].set(b2)
    slab = slab.at[W3_ROW0:W3_ROW0 + HID2, :OUTPUT_SIZE].set(w3)
    slab = slab.at[B3_ROW:B3_ROW + 1, :OUTPUT_SIZE].set(b3)
    return slab


def dqn_forward(x, slab):
    """x: [B, 4] f32, slab: packed params -> [B, 2] Q-values."""
    B = x.shape[0]
    b_pad = ((B + 7) // 8) * 8                       # sublane-align batch
    if b_pad != B:
        x = jnp.pad(x, ((0, b_pad - B), (0, 0)))

    vmem = pl.BlockSpec(memory_space=pltpu.MemorySpace.VMEM)
    out_pad = pl.pallas_call(
        dqn_kernel,
        out_shape=jax.ShapeDtypeStruct((b_pad, LANE), jnp.float32),
        in_specs=[vmem, vmem],
        out_specs=vmem,
    )(x, slab)
    return out_pad[:B, :OUTPUT_SIZE]


def init_params(key):
    """Deterministic init mirroring nn.Linear default: U(-1/sqrt(fan_in), +)."""
    def linear(key, fan_in, fan_out):
        kw, kb = jax.random.split(key)
        bound = 1.0 / jnp.sqrt(jnp.float32(fan_in))
        # stored as [in, out] so the kernel computes x @ W
        w = jax.random.uniform(kw, (fan_in, fan_out), jnp.float32, -bound, bound)
        b = jax.random.uniform(kb, (1, fan_out), jnp.float32, -bound, bound)
        return w, b

    k1, k2, k3 = jax.random.split(key, 3)
    w1, b1 = linear(k1, INPUT_SIZE, HID1)
    w2, b2 = linear(k2, HID1, HID2)
    w3, b3 = linear(k3, HID2, OUTPUT_SIZE)
    return (w1, b1, w2, b2, w3, b3)


def dqn_reference(x, params):
    """Pure-JAX reference for correctness check."""
    w1, b1, w2, b2, w3, b3 = params
    h1 = jnp.maximum(x @ w1 + b1, 0.0)
    h2 = jnp.maximum(h1 @ w2 + b2, 0.0)
    return h2 @ w3 + b3


if __name__ == "__main__":
    key = jax.random.PRNGKey(0)
    kx, kp = jax.random.split(key)

    B = 8  # small batch of CartPole observations
    x = jax.random.normal(kx, (B, INPUT_SIZE), jnp.float32)
    params = init_params(kp)
    slab = pack_params(params)   # pack once; reuse across forward calls

    out = dqn_forward(x, slab)
    out = jax.block_until_ready(out)

    ref = dqn_reference(x, params)
    assert out.shape == (B, OUTPUT_SIZE), out.shape
    assert jnp.allclose(out, ref, atol=1e-5, rtol=1e-5), "mismatch vs reference"

    print("KERNEL_OK")
</pallas_src>

<mosaic_0001>
module attributes {stable_mosaic.version = 11 : i64} {
  func.func @dqn_kernel(%arg0: memref<8x4xf32, #tpu.memory_space<vmem>>, %arg1: memref<264x128xf32, #tpu.memory_space<vmem>>, %arg2: memref<8x128xf32, #tpu.memory_space<vmem>>) attributes {dimension_semantics = [], scalar_prefetch = 0 : i64, scratch_operands = 0 : i64, tpu.core_type = #tpu.core_type<tc>} {
    %c0 = arith.constant 0 : index
    %c0_0 = arith.constant 0 : index
    %0 = vector.load %arg0[%c0, %c0_0] : memref<8x4xf32, #tpu.memory_space<vmem>>, vector<8x4xf32>
    %c4 = arith.constant 4 : index
    %c0_1 = arith.constant 0 : index
    %1 = vector.load %arg1[%c4, %c0_1] : memref<264x128xf32, #tpu.memory_space<vmem>>, vector<1x128xf32>
    %c5 = arith.constant 5 : index
    %c0_2 = arith.constant 0 : index
    %2 = vector.load %arg1[%c5, %c0_2] : memref<264x128xf32, #tpu.memory_space<vmem>>, vector<1x128xf32>
    %c6 = arith.constant 6 : index
    %c0_3 = arith.constant 0 : index
    %3 = vector.load %arg1[%c6, %c0_3] : memref<264x128xf32, #tpu.memory_space<vmem>>, vector<1x128xf32>
    %c0_4 = arith.constant 0 : index
    %c0_5 = arith.constant 0 : index
    %4 = vector.load %arg1[%c0_4, %c0_5] : memref<264x128xf32, #tpu.memory_space<vmem>>, vector<4x128xf32>
    %c8 = arith.constant 8 : index
    %c0_6 = arith.constant 0 : index
    %5 = vector.load %arg1[%c8, %c0_6] : memref<264x128xf32, #tpu.memory_space<vmem>>, vector<128x128xf32>
    %c136 = arith.constant 136 : index
    %c0_7 = arith.constant 0 : index
    %6 = vector.load %arg1[%c136, %c0_7] : memref<264x128xf32, #tpu.memory_space<vmem>>, vector<128x128xf32>
    %7 = vector.shape_cast %1 : vector<1x128xf32> to vector<1x128xf32>
    %8 = vector.broadcast %7 : vector<1x128xf32> to vector<8x128xf32>
    %9 = vector.extract_strided_slice %0 {offsets = [0, 0], sizes = [8, 1], strides = [1, 1]} : vector<8x4xf32> to vector<8x1xf32>
    %10 = vector.extract_strided_slice %4 {offsets = [0, 0], sizes = [1, 128], strides = [1, 1]} : vector<4x128xf32> to vector<1x128xf32>
    %11 = vector.broadcast %9 : vector<8x1xf32> to vector<8x128xf32>
    %12 = vector.broadcast %10 : vector<1x128xf32> to vector<8x128xf32>
    %13 = arith.mulf %11, %12 : vector<8x128xf32>
    %14 = arith.addf %8, %13 : vector<8x128xf32>
    %15 = vector.extract_strided_slice %0 {offsets = [0, 1], sizes = [8, 1], strides = [1, 1]} : vector<8x4xf32> to vector<8x1xf32>
    %16 = vector.extract_strided_slice %4 {offsets = [1, 0], sizes = [1, 128], strides = [1, 1]} : vector<4x128xf32> to vector<1x128xf32>
    %17 = vector.broadcast %15 : vector<8x1xf32> to vector<8x128xf32>
    %18 = vector.broadcast %16 : vector<1x128xf32> to vector<8x128xf32>
    %19 = arith.mulf %17, %18 : vector<8x128xf32>
    %20 = arith.addf %14, %19 : vector<8x128xf32>
    %21 = vector.extract_strided_slice %0 {offsets = [0, 2], sizes = [8, 1], strides = [1, 1]} : vector<8x4xf32> to vector<8x1xf32>
    %22 = vector.extract_strided_slice %4 {offsets = [2, 0], sizes = [1, 128], strides = [1, 1]} : vector<4x128xf32> to vector<1x128xf32>
    %23 = vector.broadcast %21 : vector<8x1xf32> to vector<8x128xf32>
    %24 = vector.broadcast %22 : vector<1x128xf32> to vector<8x128xf32>
    %25 = arith.mulf %23, %24 : vector<8x128xf32>
    %26 = arith.addf %20, %25 : vector<8x128xf32>
    %27 = vector.extract_strided_slice %0 {offsets = [0, 3], sizes = [8, 1], strides = [1, 1]} : vector<8x4xf32> to vector<8x1xf32>
    %28 = vector.extract_strided_slice %4 {offsets = [3, 0], sizes = [1, 128], strides = [1, 1]} : vector<4x128xf32> to vector<1x128xf32>
    %29 = vector.broadcast %27 : vector<8x1xf32> to vector<8x128xf32>
    %30 = vector.broadcast %28 : vector<1x128xf32> to vector<8x128xf32>
    %31 = arith.mulf %29, %30 : vector<8x128xf32>
    %32 = arith.addf %26, %31 : vector<8x128xf32>
    %cst = arith.constant 0.000000e+00 : f32
    %33 = vector.broadcast %cst : f32 to vector<8x128xf32>
    %34 = arith.maximumf %32, %33 : vector<8x128xf32>
    %cst_8 = arith.constant dense<0.000000e+00> : vector<8x128xf32>
    %35 = tpu.matmul %34, %5, %cst_8 {dimension_numbers = #tpu.dot_dimension_numbers<[1], [0], [0], [1], [0, 0, 1, 1], [], []>} : vector<8x128xf32>, vector<128x128xf32>, vector<8x128xf32> -> vector<8x128xf32>
    %36 = vector.broadcast %2 : vector<1x128xf32> to vector<8x128xf32>
    %37 = arith.addf %35, %36 : vector<8x128xf32>
    %cst_9 = arith.constant 0.000000e+00 : f32
    %38 = vector.broadcast %cst_9 : f32 to vector<8x128xf32>
    %39 = arith.maximumf %37, %38 : vector<8x128xf32>
    %cst_10 = arith.constant dense<0.000000e+00> : vector<8x128xf32>
    %40 = tpu.matmul %39, %6, %cst_10 {dimension_numbers = #tpu.dot_dimension_numbers<[1], [0], [0], [1], [0, 0, 1, 1], [], []>} : vector<8x128xf32>, vector<128x128xf32>, vector<8x128xf32> -> vector<8x128xf32>
    %41 = vector.broadcast %3 : vector<1x128xf32> to vector<8x128xf32>
    %42 = arith.addf %40, %41 : vector<8x128xf32>
    %c0_11 = arith.constant 0 : index
    %c0_12 = arith.constant 0 : index
    %43 = vector.load %arg2[%c0_11, %c0_12] : memref<8x128xf32, #tpu.memory_space<vmem>>, vector<8x128xf32>
    tpu.vector_store %arg2[%c0_11, %c0_12], %42 {strides = array<i32>} : memref<8x128xf32, #tpu.memory_space<vmem>>, vector<8x128xf32>,
    return
  }
}

</mosaic_0001>

<bundles_post_ra>
// kernel: tpu_custom_call.1
= control target key start
LH: loop header
LB: loop body
LE: loop exit
PB: predicated region body
PF: predicated region fallthrough
CT: control target
= control target key end

     0   :  { %7 = vsyncpa [#allocation3], 0  ;;  %s508_s0 = inlined_call_operand.vmem [shape: f32[8,4], index: 0, kind: input, shape index: {}]   ;;  %s509_s1 = inlined_call_operand.hbm [shape: f32[264,128], index: 1, kind: input, shape index: {}]   ;;  %s510_s2 = inlined_call_operand.hbm [shape: f32[8,128], index: 2, kind: output, shape index: {}]  }
   0x1   :  { %8 = vsyncpa [#allocation4], 0  ;;  %s440_s9 = smov [#allocation2]  }
   0x2   :  { %s16_s10 = sshll.u32 %s440_s9, 4  ;;  %s17_s10 = int_to_ptr.vmem [resolvable:$true] %s16_s10 }
   0x3   :  { %s404_s11 = scalar_lea.vmem %s17_s10, 4224  ;;  %p409_p1 = scmp.lt.s32.totalorder %s17_s10, %s17_s10 }
   0x4   :  { %p405_p0 = scmp.ne.s32.totalorder %s17_s10, %s404_s11  ;;  %p410_p2 = scmp.lt.s32.totalorder %s404_s11, %s404_s11 }
   0x6   :  { %p411_p3 = por %p410_p2, %p409_p1 }
   0x8   :  { %p412_p4 = pnand %p411_p3, %p405_p0 }
   0xa   :  { %415 = shalt.err (!%p412_p4)
}
   0xb   :  { %s441_s12 = smov 128   ;;  %s442_s13 = smov 8  }
   0xc   :  { %22 = dma.hbm_to_vmem [thread:$0]  %s509_s1, 4224, %s17_s10, [#allocation3], %s441_s12, %s441_s12, %s442_s13  }
   0xd   :  { %436 = dma.done.wait [#allocation3], 4224  }
   0xe   :  { %437 = vsyncadd [#allocation3], 4294963072  ;;  %v443_v0 = vmov 0   ;;  %v444_v1 = vmov 2   ;;  %v445_v2 = vmov 0.0   ;;  %v26_v3 = vld [vmem:[%s508_s0] sm:$0xff]  ;;  %v72_v35 = vlaneseq }
   0xf   :  { %391 = vset.pattern.permute.xlu0 %v443_v0  ;;  %393 = vset.pattern.permute.xlu1 %v444_v1  ;;  %v46_v4 = vld [vmem:[#allocation2 + $0x80] sm:$0xff]  ;;  %v45_v5 = vld [vmem:[#allocation2 + $0x78] sm:$0xff]  ;;  %v446_v6 = vmov 1   ;;  %v447_v7 = vmov 3   ;;  %v44_v8 = vld [vmem:[#allocation2 + $0x70] sm:$0xff]  ;;  %vm448_vm0 = vmmov 0  }
  0x10   :  { %311 = vmatprep.subr.mxu0 %v445_v2  ;;  %346 = vmatprep.subr.mxu1 %v445_v2  ;;  %v43_v9 = vld [vmem:[#allocation2 + $0x68] sm:$0xff]  ;;  %v42_v10 = vld [vmem:[#allocation2 + $0x60] sm:$0xff]  ;;  %v41_v11 = vld [vmem:[#allocation2 + $0x58] sm:$0xff]  ;;  %v73_v36 = vshrl.u32 %v72_v35, 7  ;;  %s449_s0 = smov [#allocation5]  }
  0x11   :  { %69 = vperm.xlu0 %391, %v26_v3   ;;  %89 = vperm.xlu1 %393, %v26_v3   ;;  %v62_v12 = vld [vmem:[#allocation2 + $0x100] sm:$0xff]  ;;  %v61_v13 = vld [vmem:[#allocation2 + $0xf8] sm:$0xff]  ;;  %v40_v14 = vld [vmem:[#allocation2 + $0x50] sm:$0xff]  ;;  %s265_s1 = sshll.u32 %s449_s0, 4  ;;  %s266_s1 = int_to_ptr.vmem [resolvable:$true] %s265_s1 }
  0x12   :  { %312 = vmatpush3.msra.mxu0 %v46_v4  ;;  %343 = vmatprep.mubr.msk.f32.mxu0 %vm448_vm0, %v445_v2  ;;  %v60_v15 = vld [vmem:[#allocation2 + $0xf0] sm:$0xff]  ;;  %v39_v16 = vld [vmem:[#allocation2 + $0x48] sm:$0xff]  ;;  %v38_v18 = vld [vmem:[#allocation2 + $0x40] sm:$0xff]  ;;  %v74_v37 = vsub.s32 0, %v73_v36  ;;  %v84_v40 = vsub.s32 1, %v73_v36  ;;  %v94_v42 = vsub.s32 2, %v73_v36  ;;  %p421_p6 = scmp.lt.s32.totalorder %s266_s1, %s266_s1 }
  0x13   :  { %313 = vmatprep.subr.mxu0 %v445_v2  ;;  %378 = vmatprep.mubr.msk.f32.mxu1 %vm448_vm0, %v445_v2  ;;  %v59_v17 = vld [vmem:[#allocation2 + $0xe8] sm:$0xff]  ;;  %v58_v19 = vld [vmem:[#allocation2 + $0xe0] sm:$0xff]  ;;  %v37_v20 = vld [vmem:[#allocation2 + $0x38] sm:$0xff]  ;;  %v104_v44 = vsub.s32 3, %v73_v36  ;;  %s416_s18 = scalar_lea.vmem %s266_s1, 128 }
  0x14   :  { %314 = vmatpush3.msra.mxu0 %v45_v5  ;;  %347 = vmatpush3.msra.mxu1 %v62_v12  ;;  %v57_v21 = vld [vmem:[#allocation2 + $0xd8] sm:$0xff]  ;;  %v36_v22 = vld [vmem:[#allocation2 + $0x30] sm:$0xff]  ;;  %v35_v24 = vld [vmem:[#allocation2 + $0x28] sm:$0xff]  ;;  %p417_p5 = scmp.ne.s32.totalorder %s266_s1, %s416_s18  ;;  %p422_p7 = scmp.lt.s32.totalorder %s416_s18, %s416_s18 }
  0x15   :  { %392 = vset.pattern.permute.xlu0 %v446_v6  ;;  %394 = vset.pattern.permute.xlu1 %v447_v7  ;;  %v56_v23 = vld [vmem:[#allocation2 + $0xd0] sm:$0xff]  ;;  %v55_v25 = vld [vmem:[#allocation2 + $0xc8] sm:$0xff]  ;;  %v34_v26 = vld [vmem:[#allocation2 + $0x20] sm:$0xff] }
  0x16   :  { %79 = vperm.xlu0 %392, %v26_v3   ;;  %99 = vperm.xlu1 %394, %v26_v3   ;;  %v54_v27 = vld [vmem:[#allocation2 + $0xc0] sm:$0xff]  ;;  %v33_v28 = vld [vmem:[#allocation2 + $0x18] sm:$0xff]  ;;  %v32_v30 = vld [vmem:[#allocation2 + $0x10] sm:$0xff]  ;;  %p423_p8 = por %p422_p7, %p421_p6 }
  0x17   :  { %315 = vmatprep.subr.mxu0 %v445_v2  ;;  %348 = vmatprep.subr.mxu1 %v445_v2  ;;  %v53_v29 = vld [vmem:[#allocation2 + $0xb8] sm:$0xff]  ;;  %v52_v31 = vld [vmem:[#allocation2 + $0xb0] sm:$0xff]  ;;  %v31_v32 = vld [vmem:[#allocation2 + $0x8] sm:$0xff] }
  0x18   :  { %316 = vmatpush3.msra.mxu0 %v44_v8  ;;  %349 = vmatpush3.msra.mxu1 %v61_v13  ;;  %v51_v33 = vld [vmem:[#allocation2 + $0xa8] sm:$0xff]  ;;  %v50_v34 = vld [vmem:[#allocation2 + $0xa0] sm:$0xff]  ;;  %v49_v60 = vld [vmem:[#allocation2 + $0x98] sm:$0xff]  ;;  %p424_p9 = pnand %p423_p8, %p417_p5 }
  0x19   :  { %317 = vmatprep.subr.mxu0 %v445_v2  ;;  %350 = vmatprep.subr.mxu1 %v445_v2  ;;  %v30_v38 = vld [vmem:[#allocation2] sm:$0xf]  ;;  %v274_v47 = vld [vmem:[#allocation2 + $0x4] ss:$0 sm:$0xff]  ;;  %v48_v61 = vld [vmem:[#allocation2 + $0x90] sm:$0xff] }
  0x1a   :  { %318 = vmatpush3.msra.mxu0 %v43_v9  ;;  %395 = vset.pattern.permute.xlu0 %v447_v7  ;;  %v75_v39 = vrot.slane %v30_v38, %v74_v37  ;;  %v85_v46 = vrot.slane %v30_v38, %v84_v40  ;;  %v95_v48 = vrot.slane %v30_v38, %v94_v42  ;;  %v47_v62 = vld [vmem:[#allocation2 + $0x88] sm:$0xff]  ;;  %v275_v63 = vld [vmem:[#allocation2 + $0x5] ss:$0 sm:$0xff]  ;;  %v276_v5 = vld [vmem:[#allocation2 + $0x6] ss:$0 sm:$0xff] }
  0x1b   :  { %319 = vmatprep.subr.mxu0 %v445_v2  ;;  %351 = vmatpush3.msra.mxu1 %v60_v15  ;;  %v105_v49 = vrot.slane %v30_v38, %v104_v44 }
  0x1c   :  { %320 = vmatpush3.msra.mxu0 %v42_v10  ;;  %352 = vmatprep.subr.mxu1 %v445_v2 }
  0x1d   :  { %321 = vmatprep.subr.mxu0 %v445_v2  ;;  %353 = vmatpush3.msra.mxu1 %v59_v17 }
  0x1e   :  { %322 = vmatpush3.msra.mxu0 %v41_v11  ;;  %354 = vmatprep.subr.mxu1 %v445_v2 }
  0x1f   :  { %323 = vmatprep.subr.mxu0 %v445_v2  ;;  %355 = vmatpush3.msra.mxu1 %v58_v19 }
  0x20   :  { %324 = vmatpush3.msra.mxu0 %v40_v14  ;;  %356 = vmatprep.subr.mxu1 %v445_v2 }
  0x21   :  { %325 = vmatprep.subr.mxu0 %v445_v2  ;;  %357 = vmatpush3.msra.mxu1 %v57_v21 }
  0x22   :  { %326 = vmatpush3.msra.mxu0 %v39_v16  ;;  %358 = vmatprep.subr.mxu1 %v445_v2 }
  0x23   :  { %327 = vmatprep.subr.mxu0 %v445_v2  ;;  %359 = vmatpush3.msra.mxu1 %v56_v23 }
  0x24   :  { %328 = vmatpush3.msra.mxu0 %v38_v18  ;;  %360 = vmatprep.subr.mxu1 %v445_v2 }
  0x25   :  { %329 = vmatprep.subr.mxu0 %v445_v2  ;;  %361 = vmatpush3.msra.mxu1 %v55_v25 }
  0x26   :  { %330 = vmatpush3.msra.mxu0 %v37_v20  ;;  %362 = vmatprep.subr.mxu1 %v445_v2 }
  0x27   :  { %331 = vmatprep.subr.mxu0 %v445_v2  ;;  %363 = vmatpush3.msra.mxu1 %v54_v27 }
  0x28   :  { %332 = vmatpush3.msra.mxu0 %v36_v22  ;;  %364 = vmatprep.subr.mxu1 %v445_v2 }
  0x29   :  { %333 = vmatprep.subr.mxu0 %v445_v2  ;;  %365 = vmatpush3.msra.mxu1 %v53_v29 }
  0x2a   :  { %334 = vmatpush3.msra.mxu0 %v35_v24  ;;  %366 = vmatprep.subr.mxu1 %v445_v2 }
  0x2b   :  { %335 = vmatprep.subr.mxu0 %v445_v2  ;;  %367 = vmatpush3.msra.mxu1 %v52_v31 }
  0x2c   :  { %336 = vmatpush3.msra.mxu0 %v34_v26  ;;  %368 = vmatprep.subr.mxu1 %v445_v2 }
  0x2d   :  { %337 = vmatprep.subr.mxu0 %v445_v2  ;;  %369 = vmatpush3.msra.mxu1 %v51_v33 }
  0x2e   :  { %338 = vmatpush3.msra.mxu0 %v33_v28  ;;  %370 = vmatprep.subr.mxu1 %v445_v2 }
  0x2f   :  { %339 = vmatprep.subr.mxu0 %v445_v2  ;;  %371 = vmatpush3.msra.mxu1 %v50_v34 }
  0x30   :  { %340 = vmatpush3.msra.mxu0 %v32_v30  ;;  %372 = vmatprep.subr.mxu1 %v445_v2 }
  0x31   :  { %341 = vmatprep.subr.mxu0 %v445_v2  ;;  %373 = vmatpush3.msra.mxu1 %v49_v60 }
  0x32   :  { %342 = vmatpush3.msra.mxu0 %v31_v32  ;;  %374 = vmatprep.subr.mxu1 %v445_v2 }
  0x33   :  { %375 = vmatpush3.msra.mxu1 %v48_v61 }
  0x34   :  { %376 = vmatprep.subr.mxu1 %v445_v2 }
  0x35   :  { %377 = vmatpush3.msra.mxu1 %v47_v62 }
  0x8c   :  { %v70_v41 = vpop.permute.xlu0 %69  ;;  %v90_v43 = vpop.permute.xlu1 %89 }
  0x8d   :  { %v76_v45 = vmul.f32 %v75_v39, %v70_v41  ;;  %v96_v54 = vmul.f32 %v95_v48, %v90_v43 }
  0x8f   :  { %v77_v52 = vadd.f32 %v274_v47, %v76_v45 }
  0x91   :  { %v80_v50 = vpop.permute.xlu0 %79  ;;  %v100_v51 = vpop.permute.xlu1 %99 }
  0x92   :  { %v86_v53 = vmul.f32 %v85_v46, %v80_v50  ;;  %v106_v56 = vmul.f32 %v105_v49, %v100_v51 }
  0x94   :  { %v87_v55 = vadd.f32 %v86_v53, %v77_v52 }
  0x96   :  { %v97_v57 = vadd.f32 %v96_v54, %v87_v55 }
  0x98   :  { %v107_v58 = vadd.f32 %v106_v56, %v97_v57 }
  0x9a   :  { %v108_v59 = vmax.f32 %v107_v58, 0.0 }
  0x9c   :  { %344 = vmatmul.mubr.f32.vlgmr.msra.gmra.mxu0 %v108_v59 }
 0x15c   :  { %v179_v0 = vpop.f32.mrf.mxu0 }
 0x15d   :  { %v180_v1 = vadd.f32 %v275_v63, %v179_v0 }
 0x15e   :  { %v345_v3 = vpop.f32.mrf.mxu0 }
 0x15f   :  { %v183_v4 = vmax.f32 %v180_v1, 0.0 }
 0x161   :  { %379 = vmatmul.mubr.f32.vlgmr.msra.gmra.mxu1 %v183_v4 }
 0x221   :  { %v254_v6 = vpop.f32.mrf.mxu1 }
 0x222   :  { %v255_v7 = vadd.f32 %v276_v5, %v254_v6 }
 0x223   :  { %v380_v8 = vpop.f32.mrf.mxu1 }
 0x224   :  { %258 = vst [vmem:[#allocation5] sm:$0xff] %v255_v7 }
 0x225   :  { %427 = shalt.err (!%p424_p9)
}
 0x226   :  { %268 = dma.vmem_to_hbm [thread:$0]  %s266_s1, 128, %s510_s2, [#allocation4]  }
 0x227   :  { %438 = dma.done.wait [#allocation4], 128  }
 0x228   :  { %439 = vsyncadd [#allocation4], 4294967168 }
 0x229   :  { %272 = vsyncpa [#allocation3], 1 }
 0x22a   :  { %273 = vsyncpa [#allocation4], 1 }

</bundles_post_ra>
